<compile_context>
chip_gen: v7x
topology: tpu7x:2x2x1
jax: 0.10.0
libtpu: 0.0.40
codegen_flags: <defaults>
</compile_context>

<pallas_src>
import math

import jax
import jax.numpy as jnp
from jax import lax
from jax.experimental import pallas as pl
from jax.experimental.pallas import tpu as pltpu

_INV_SQRT2 = 1.0 / math.sqrt(2.0)


def _round_up(x, m):
    return ((x + m - 1) // m) * m


# --------------------------------------------------------------------------------------
# Kernels
# --------------------------------------------------------------------------------------

def ffn_kernel_f32_out(x_ref, w1_ref, b1_ref, w2_ref, b2_ref, o_ref):
    """One (row-tile i, hidden-tile k) step, accumulating directly into the f32 output.

    Kernel-visible shapes:
      x_ref  : (tm, E)     w1_ref : (E, th)    b1_ref : (1, th) f32
      w2_ref : (th, E)     b2_ref : (1, E) f32
      o_ref  : (tm, E) f32 (resident across k -> doubles as the accumulator)
    """
    hk = pl.program_id(1)

    # First matmul on the MXU; operands may be bf16, accumulation is f32.
    h = jnp.dot(x_ref[...], w1_ref[...], preferred_element_type=jnp.float32)
    h = h + b1_ref[...]

    # Exact GELU (torch nn.GELU default), f32 on the VPU.
    g = 0.5 * h * (1.0 + lax.erf(h * _INV_SQRT2))

    # Second matmul: this hidden tile's partial contribution.
    part = jnp.dot(g.astype(w2_ref.dtype), w2_ref[...],
                   preferred_element_type=jnp.float32)

    @pl.when(hk == 0)
    def _():
        o_ref[...] = part + b2_ref[...]

    @pl.when(hk != 0)
    def _():
        o_ref[...] = o_ref[...] + part
    # Dropout with p=0.0 is the identity; nothing to do.


def ffn_kernel_acc(x_ref, w1_ref, b1_ref, w2_ref, b2_ref, o_ref, acc_ref):
    """Same computation, but with a f32 scratch accumulator for non-f32 outputs."""
    hk = pl.program_id(1)

    @pl.when(hk == 0)
    def _():
        acc_ref[...] = jnp.zeros_like(acc_ref)

    h = jnp.dot(x_ref[...], w1_ref[...], preferred_element_type=jnp.float32)
    h = h + b1_ref[...]
    g = 0.5 * h * (1.0 + lax.erf(h * _INV_SQRT2))
    acc_ref[...] += jnp.dot(g.astype(w2_ref.dtype), w2_ref[...],
                            preferred_element_type=jnp.float32)

    @pl.when(hk == pl.num_programs(1) - 1)
    def _():
        o_ref[...] = (acc_ref[...] + b2_ref[...]).astype(o_ref.dtype)


# --------------------------------------------------------------------------------------
# Host-side helpers
# --------------------------------------------------------------------------------------

def _device_defaults():
    """Generation-aware (tm, th, vmem_limit_bytes) defaults."""
    tm, th, vmem = 512, 512, 48 * 1024 * 1024      # safe fallback (fits v7x's 64 MiB)
    try:
        info = pltpu.get_tpu_info()
        cap = getattr(info, "vmem_capacity_bytes", None)
        if cap is not None:
            if cap >= 100 * 1024 * 1024:            # v5e / v6e: 128 MiB physical VMEM
                tm, th, vmem = 768, 1024, 100 * 1024 * 1024
            else:                                   # v7x: 64 MiB physical VMEM
                tm, th, vmem = 512, 512, 52 * 1024 * 1024
    except Exception:
        pass
    return tm, th, vmem


def prepare_ffn_weights(w1, b1, w2, b2, *, th=None, param_dtype=jnp.bfloat16):
    """One-time weight preparation: hidden-dim padding + dtype cast, done once, not per call."""
    E, H = w1.shape
    assert w2.shape == (H, E) and b1.shape == (H,) and b2.shape == (E,)
    if th is None:
        _, th, _ = _device_defaults()

    if th >= H:
        th_eff, h_pad = H, H                        # single hidden tile (block == full dim)
    else:
        th_eff = max(128, (th // 128) * 128)        # lane / MXU-edge aligned
        h_pad = _round_up(H, th_eff)

    w1p, b1p, w2p = w1, b1, w2
    if h_pad != H:
        # Zero-padded hidden columns/rows contribute exactly 0 to the output.
        w1p = jnp.pad(w1p, ((0, 0), (0, h_pad - H)))
        b1p = jnp.pad(b1p, ((0, h_pad - H),))
        w2p = jnp.pad(w2p, ((0, h_pad - H), (0, 0)))

    return dict(
        w1=w1p.astype(param_dtype),
        b1=b1p.reshape(1, h_pad).astype(jnp.float32),
        w2=w2p.astype(param_dtype),
        b2=b2.reshape(1, E).astype(jnp.float32),
        E=E, H=H, h_pad=h_pad, th_eff=th_eff,
        param_dtype=jnp.dtype(param_dtype),
    )


def feed_forward(x, w1=None, b1=None, w2=None, b2=None, *, prepared=None,
                 tm=None, th=None, compute_dtype=jnp.bfloat16, out_dtype=None,
                 vmem_limit_bytes=None):
    """x: (B, T, E).  Returns (B, T, E) = GELU(x @ W1 + b1) @ W2 + b2  (Dropout p=0)."""
    tm_def, th_def, vmem_def = _device_defaults()
    tm = tm or tm_def
    th = th or th_def
    vmem_limit_bytes = vmem_limit_bytes or vmem_def

    B, T, E = x.shape
    out_dtype = jnp.dtype(out_dtype or x.dtype)
    compute_dtype = jnp.dtype(compute_dtype)

    if prepared is None:
        prepared = prepare_ffn_weights(w1, b1, w2, b2, th=th, param_dtype=compute_dtype)
    assert prepared["E"] == E
    h_pad, th_eff = prepared["h_pad"], prepared["th_eff"]

    # ---- row tiling: sublane-packing-aware rounding + balanced tiles (bounded tail). ----
    N = B * T
    mult = 16 if compute_dtype == jnp.dtype(jnp.bfloat16) else 8
    tm_req = max(mult, _round_up(tm, mult))
    n_tiles = -(-N // tm_req)
    tm_eff = _round_up(-(-N // n_tiles), mult)
    n_pad = n_tiles * tm_eff

    x2 = x.reshape(N, E).astype(compute_dtype)
    if n_pad != N:
        x2 = jnp.pad(x2, ((0, n_pad - N), (0, 0)))

    grid = (n_pad // tm_eff, h_pad // th_eff)

    # ---- kernel selection: f32 output accumulates in-place, else f32 scratch + cast. ----
    if out_dtype == jnp.dtype(jnp.float32):
        kernel = ffn_kernel_f32_out
        scratch_shapes = []
    else:
        kernel = ffn_kernel_acc
        scratch_shapes = [pltpu.VMEM((tm_eff, E), jnp.float32)]

    out = pl.pallas_call(
        kernel,
        out_shape=jax.ShapeDtypeStruct((n_pad, E), out_dtype),
        grid_spec=pltpu.PrefetchScalarGridSpec(
            num_scalar_prefetch=0,
            grid=grid,
            in_specs=[
                pl.BlockSpec((tm_eff, E), lambda i, k: (i, 0)),   # x row-tile (resident in k)
                pl.BlockSpec((E, th_eff), lambda i, k: (0, k)),   # W1 hidden-tile (streamed)
                pl.BlockSpec((1, th_eff), lambda i, k: (0, k)),   # b1 hidden-tile
                pl.BlockSpec((th_eff, E), lambda i, k: (k, 0)),   # W2 hidden-tile (streamed)
                pl.BlockSpec((1, E),      lambda i, k: (0, 0)),   # b2 (resident)
            ],
            out_specs=pl.BlockSpec((tm_eff, E), lambda i, k: (i, 0)),
            scratch_shapes=scratch_shapes,
        ),
        compiler_params=pltpu.CompilerParams(
            dimension_semantics=("parallel", "arbitrary"),
            vmem_limit_bytes=vmem_limit_bytes,
        ),
    )(x2, prepared["w1"], prepared["b1"], prepared["w2"], prepared["b2"])

    return out[:N].reshape(B, T, E)


# --------------------------------------------------------------------------------------
# Reference + test harness
# --------------------------------------------------------------------------------------

def ref_feed_forward(x, w1, b1, w2, b2):
    h = x @ w1 + b1
    g = 0.5 * h * (1.0 + lax.erf(h * _INV_SQRT2))
    return g @ w2 + b2


def _make_params(key, E, H):
    kw1, kb1, kw2, kb2 = jax.random.split(key, 4)
    lim1 = 1.0 / math.sqrt(E)
    lim2 = 1.0 / math.sqrt(H)
    w1 = jax.random.uniform(kw1, (E, H), jnp.float32, -lim1, lim1)
    b1 = jax.random.uniform(kb1, (H,), jnp.float32, -lim1, lim1)
    w2 = jax.random.uniform(kw2, (H, E), jnp.float32, -lim2, lim2)
    b2 = jax.random.uniform(kb2, (E,), jnp.float32, -lim2, lim2)
    return w1, b1, w2, b2


if __name__ == "__main__":
    key = jax.random.PRNGKey(0)
    k1, k2, k3, k4 = jax.random.split(key, 4)

    # --- Config A: module's toy size (emb_dim=32, batch=2, seq=8), exact f32 path. ---
    B, T, E = 2, 8, 32
    H = 4 * E
    w1, b1, w2, b2 = _make_params(k1, E, H)
    x = jax.random.normal(k2, (B, T, E), jnp.float32)

    prep_a = prepare_ffn_weights(w1, b1, w2, b2, th=H, param_dtype=jnp.float32)
    out = jax.block_until_ready(
        feed_forward(x, prepared=prep_a, compute_dtype=jnp.float32))
    ref = ref_feed_forward(x, w1, b1, w2, b2)
    assert out.shape == (B, T, E)
    assert jnp.allclose(out, ref, atol=1e-5, rtol=1e-5), "f32 path mismatch vs reference"

    # --- Config B: lane-dense emb (128), odd seq (row padding), 2 hidden tiles,
    #     default bf16 MXU operands with f32 accumulation and f32 output. ---
    B2, T2, E2 = 2, 13, 128
    H2 = 4 * E2
    w1b, b1b, w2b, b2b = _make_params(k3, E2, H2)
    xb = jax.random.normal(k4, (B2, T2, E2), jnp.float32)

    prep_b = prepare_ffn_weights(w1b, b1b, w2b, b2b, th=256, param_dtype=jnp.bfloat16)
    out_b = jax.block_until_ready(feed_forward(xb, prepared=prep_b, tm=256))
    # Reference on the same bf16-quantized inputs (isolates accumulation-order /
    # intermediate-cast differences from input quantization).
    ref_b = ref_feed_forward(
        xb.astype(jnp.bfloat16).astype(jnp.float32),
        w1b.astype(jnp.bfloat16).astype(jnp.float32), b1b,
        w2b.astype(jnp.bfloat16).astype(jnp.float32), b2b)
    assert out_b.shape == (B2, T2, E2)
    assert jnp.allclose(out_b, ref_b, atol=2e-2, rtol=2e-2), "bf16 path mismatch vs reference"

    # --- Config C: same inputs, bf16 OUTPUT (exercises the scratch-accumulator kernel). ---
    out_c = jax.block_until_ready(
        feed_forward(xb, prepared=prep_b, tm=256, out_dtype=jnp.bfloat16))
    assert out_c.dtype == jnp.bfloat16 and out_c.shape == (B2, T2, E2)
    assert jnp.allclose(out_c.astype(jnp.float32), ref_b, atol=4e-2, rtol=4e-2), \
        "bf16-output path mismatch vs reference"

    print("KERNEL_OK")
</pallas_src>

<mosaic_0001>
module attributes {stable_mosaic.version = 11 : i64} {
  func.func @ffn_kernel_f32_out(%arg0: i32, %arg1: i32, %arg2: memref<16x32xf32, #tpu.memory_space<vmem>>, %arg3: memref<32x128xf32, #tpu.memory_space<vmem>>, %arg4: memref<1x128xf32, #tpu.memory_space<vmem>>, %arg5: memref<128x32xf32, #tpu.memory_space<vmem>>, %arg6: memref<1x32xf32, #tpu.memory_space<vmem>>, %arg7: memref<16x32xf32, #tpu.memory_space<vmem>>) attributes {dimension_semantics = [#tpu.dimension_semantics<parallel>, #tpu.dimension_semantics<arbitrary>], iteration_bounds = array<i64: 1, 1>, scalar_prefetch = 0 : i64, scratch_operands = 0 : i64, tpu.core_type = #tpu.core_type<tc>, window_params = [{transform_indices = @transform_0, window_bounds = array<i64: 16, 32>}, {transform_indices = @transform_1, window_bounds = array<i64: 32, 128>}, {transform_indices = @transform_2, window_bounds = array<i64: 1, 128>}, {transform_indices = @transform_3, window_bounds = array<i64: 128, 32>}, {pipeline_mode = #tpu.pipeline_mode<synchronous>, transform_indices = @transform_4, window_bounds = array<i64: 1, 32>}, {transform_indices = @transform_5, window_bounds = array<i64: 16, 32>}]} {
    %c0 = arith.constant 0 : index
    %c0_0 = arith.constant 0 : index
    %0 = vector.load %arg2[%c0, %c0_0] : memref<16x32xf32, #tpu.memory_space<vmem>>, vector<16x32xf32>
    %c0_1 = arith.constant 0 : index
    %c0_2 = arith.constant 0 : index
    %1 = vector.load %arg3[%c0_1, %c0_2] : memref<32x128xf32, #tpu.memory_space<vmem>>, vector<32x128xf32>
    %cst = arith.constant dense<0.000000e+00> : vector<16x128xf32>
    %2 = tpu.matmul %0, %1, %cst {dimension_numbers = #tpu.dot_dimension_numbers<[1], [0], [0], [1], [0, 0, 1, 1], [], []>} : vector<16x32xf32>, vector<32x128xf32>, vector<16x128xf32> -> vector<16x128xf32>
    %c0_3 = arith.constant 0 : index
    %c0_4 = arith.constant 0 : index
    %3 = vector.load %arg4[%c0_3, %c0_4] : memref<1x128xf32, #tpu.memory_space<vmem>>, vector<1x128xf32>
    %4 = vector.broadcast %3 : vector<1x128xf32> to vector<16x128xf32>
    %5 = arith.addf %2, %4 : vector<16x128xf32>
    %cst_5 = arith.constant 5.000000e-01 : f32
    %6 = vector.broadcast %cst_5 : f32 to vector<16x128xf32>
    %7 = arith.mulf %6, %5 : vector<16x128xf32>
    %cst_6 = arith.constant 0.707106769 : f32
    %8 = vector.broadcast %cst_6 : f32 to vector<16x128xf32>
    %9 = arith.mulf %5, %8 : vector<16x128xf32>
    %10 = math.erf %9 : vector<16x128xf32>
    %cst_7 = arith.constant 1.000000e+00 : f32
    %11 = vector.broadcast %cst_7 : f32 to vector<16x128xf32>
    %12 = arith.addf %11, %10 : vector<16x128xf32>
    %13 = arith.mulf %7, %12 : vector<16x128xf32>
    %c0_8 = arith.constant 0 : index
    %c0_9 = arith.constant 0 : index
    %14 = vector.load %arg5[%c0_8, %c0_9] : memref<128x32xf32, #tpu.memory_space<vmem>>, vector<128x32xf32>
    %cst_10 = arith.constant dense<0.000000e+00> : vector<16x32xf32>
    %15 = tpu.matmul %13, %14, %cst_10 {dimension_numbers = #tpu.dot_dimension_numbers<[1], [0], [0], [1], [0, 0, 1, 1], [], []>} : vector<16x128xf32>, vector<128x32xf32>, vector<16x32xf32> -> vector<16x32xf32>
    %c0_i32 = arith.constant 0 : i32
    %16 = arith.cmpi eq, %arg1, %c0_i32 : i32
    %17 = arith.extui %16 : i1 to i32
    %c0_i32_11 = arith.constant 0 : i32
    %18 = arith.cmpi ne, %17, %c0_i32_11 : i32
    scf.if %18 {
      %c0_14 = arith.constant 0 : index
      %c0_15 = arith.constant 0 : index
      %22 = vector.load %arg6[%c0_14, %c0_15] : memref<1x32xf32, #tpu.memory_space<vmem>>, vector<1x32xf32>
      %23 = vector.broadcast %22 : vector<1x32xf32> to vector<16x32xf32>
      %24 = arith.addf %15, %23 : vector<16x32xf32>
      %c0_16 = arith.constant 0 : index
      %c0_17 = arith.constant 0 : index
      %25 = vector.load %arg7[%c0_16, %c0_17] : memref<16x32xf32, #tpu.memory_space<vmem>>, vector<16x32xf32>
      tpu.vector_store %arg7[%c0_16, %c0_17], %24 {strides = array<i32>} : memref<16x32xf32, #tpu.memory_space<vmem>>, vector<16x32xf32>,
    } else {
    }
    %c0_i32_12 = arith.constant 0 : i32
    %19 = arith.cmpi ne, %arg1, %c0_i32_12 : i32
    %20 = arith.extui %19 : i1 to i32
    %c0_i32_13 = arith.constant 0 : i32
    %21 = arith.cmpi ne, %20, %c0_i32_13 : i32
    scf.if %21 {
      %c0_14 = arith.constant 0 : index
      %c0_15 = arith.constant 0 : index
      %22 = vector.load %arg7[%c0_14, %c0_15] : memref<16x32xf32, #tpu.memory_space<vmem>>, vector<16x32xf32>
      %23 = arith.addf %22, %15 : vector<16x32xf32>
      %c0_16 = arith.constant 0 : index
      %c0_17 = arith.constant 0 : index
      %24 = vector.load %arg7[%c0_16, %c0_17] : memref<16x32xf32, #tpu.memory_space<vmem>>, vector<16x32xf32>
      tpu.vector_store %arg7[%c0_16, %c0_17], %23 {strides = array<i32>} : memref<16x32xf32, #tpu.memory_space<vmem>>, vector<16x32xf32>,
    } else {
    }
    return
  }
  func.func @transform_0(%arg0: i32, %arg1: i32) -> (i32, i32) {
    %c0_i32 = arith.constant 0 : i32
    %c0_i32_0 = arith.constant 0 : i32
    return %arg0, %c0_i32 : i32, i32
  }
  func.func @transform_1(%arg0: i32, %arg1: i32) -> (i32, i32) {
    %c0_i32 = arith.constant 0 : i32
    %c0_i32_0 = arith.constant 0 : i32
    return %c0_i32, %arg1 : i32, i32
  }
  func.func @transform_2(%arg0: i32, %arg1: i32) -> (i32, i32) {
    %c0_i32 = arith.constant 0 : i32
    %c0_i32_0 = arith.constant 0 : i32
    return %c0_i32, %arg1 : i32, i32
  }
  func.func @transform_3(%arg0: i32, %arg1: i32) -> (i32, i32) {
    %c0_i32 = arith.constant 0 : i32
    %c0_i32_0 = arith.constant 0 : i32
    return %arg1, %c0_i32 : i32, i32
  }
  func.func @transform_4(%arg0: i32, %arg1: i32) -> (i32, i32) {
    %c0_i32 = arith.constant 0 : i32
    %c0_i32_0 = arith.constant 0 : i32
    %c0_i32_1 = arith.constant 0 : i32
    return %c0_i32, %c0_i32_0 : i32, i32
  }
  func.func @transform_5(%arg0: i32, %arg1: i32) -> (i32, i32) {
    %c0_i32 = arith.constant 0 : i32
    %c0_i32_0 = arith.constant 0 : i32
    return %arg0, %c0_i32 : i32, i32
  }
}

</mosaic_0001>

<bundles_post_ra>
// kernel: tpu_custom_call.1
= control target key start
LH: loop header
LB: loop body
LE: loop exit
PB: predicated region body
PF: predicated region fallthrough
CT: control target
= control target key end

     0   :  { %vm34_vm0 = vcmask 261120   ;;  %s524_s0 = inlined_call_operand.vmem [shape: f32[16,32], index: 0, kind: input, shape index: {}]   ;;  %s525_s1 = inlined_call_operand.vmem [shape: f32[32,128], index: 1, kind: input, shape index: {}]   ;;  %s526_s2 = inlined_call_operand.vmem [shape: f32[1,128], index: 2, kind: input, shape index: {}]   ;;  %s527_s3 = inlined_call_operand.vmem [shape: f32[128,32], index: 3, kind: input, shape index: {}]   ;;  %s528_s4 = inlined_call_operand.vmem [shape: f32[1,32], index: 4, kind: input, shape index: {}]   ;;  %s529_s5 = inlined_call_operand.hbm [shape: f32[16,32], index: 5, kind: output, shape index: {}]  }
   0x1   :  { %v23_v0 = vld [vmem:[%s525_s1] sm:$0xff]  ;;  %v24_v1 = vld [vmem:[%s525_s1 + $0x8] sm:$0xff]  ;;  %v25_v2 = vld [vmem:[%s525_s1 + $0x10] sm:$0xff] }
   0x2   :  { %v332_v3 = vpack.c.bf16 %v24_v1, %v23_v0  ;;  %v26_v4 = vld [vmem:[%s525_s1 + $0x18] sm:$0xff]  ;;  %v21_v5 = vld [vmem:[%s524_s0] sm:$0xff]  ;;  %v127_v8 = vld [vmem:[%s527_s3 + $0x8] sm:$0xff] }
   0x3   :  { %v336_v6 = vpack.c.bf16 %v26_v4, %v25_v2  ;;  %294 = vmatprep.mubr.msk.f32.mxu0 %vm34_vm0, %v21_v5  ;;  %v126_v7 = vld [vmem:[%s527_s3] sm:$0xff]  ;;  %v128_v9 = vld [vmem:[%s527_s3 + $0x10] sm:$0xff]  ;;  %v129_v11 = vld [vmem:[%s527_s3 + $0x18] sm:$0xff] }
   0x4   :  { %333 = vmatprep.subr.bf16.mxu0 %v332_v3  ;;  %v340_v10 = vpack.c.bf16 %v127_v8, %v126_v7  ;;  %v344_v12 = vpack.c.bf16 %v129_v11, %v128_v9  ;;  %v130_v13 = vld [vmem:[%s527_s3 + $0x20] sm:$0xff]  ;;  %v131_v14 = vld [vmem:[%s527_s3 + $0x28] sm:$0xff] }
   0x5   :  { %335 = vmatpush3.bf16.msra.mxu0 %v332_v3 }
   0x6   :  { %10 = vsyncpa [#allocation3], 0  ;;  %337 = vmatprep.subr.bf16.mxu0 %v336_v6  ;;  %341 = vmatprep.subr.bf16.mxu1 %v340_v10  ;;  %v348_v15 = vpack.c.bf16 %v131_v14, %v130_v13  ;;  %v22_v16 = vld [vmem:[%s524_s0 + $0x8] sm:$0xff]  ;;  %v132_v17 = vld [vmem:[%s527_s3 + $0x30] sm:$0xff]  ;;  %s403_s11 = smov [#allocation2]  }
   0x7   :  { %343 = vmatpush3.bf16.msra.mxu1 %v340_v10  ;;  %v133_v18 = vld [vmem:[%s527_s3 + $0x38] sm:$0xff]  ;;  %v134_v20 = vld [vmem:[%s527_s3 + $0x40] sm:$0xff]  ;;  %v135_v21 = vld [vmem:[%s527_s3 + $0x48] sm:$0xff]  ;;  %s247_s12 = sshll.u32 %s403_s11, 4  ;;  %s248_s12 = int_to_ptr.vmem [resolvable:$true] %s247_s12 }
   0x8   :  { %345 = vmatprep.subr.bf16.mxu1 %v344_v12  ;;  %v352_v19 = vpack.c.bf16 %v133_v18, %v132_v17  ;;  %v356_v22 = vpack.c.bf16 %v135_v21, %v134_v20  ;;  %v136_v23 = vld [vmem:[%s527_s3 + $0x50] sm:$0xff]  ;;  %v137_v24 = vld [vmem:[%s527_s3 + $0x58] sm:$0xff]  ;;  %v138_v26 = vld [vmem:[%s527_s3 + $0x60] sm:$0xff]  ;;  %s379_s13 = scalar_lea.vmem %s248_s12, 256  ;;  %p384_p1 = scmp.lt.s32.totalorder %s248_s12, %s248_s12 }
   0x9   :  { %339 = vmatpush3.bf16.msra.mxu0 %v336_v6  ;;  %v360_v25 = vpack.c.bf16 %v137_v24, %v136_v23  ;;  %v139_v27 = vld [vmem:[%s527_s3 + $0x68] sm:$0xff]  ;;  %v140_v29 = vld [vmem:[%s527_s3 + $0x70] sm:$0xff]  ;;  %v141_v30 = vld [vmem:[%s527_s3 + $0x78] sm:$0xff]  ;;  %p380_p0 = scmp.ne.s32.totalorder %s248_s12, %s379_s13  ;;  %p385_p2 = scmp.lt.s32.totalorder %s379_s13, %s379_s13 }
   0xa   :  { %v364_v28 = vpack.c.bf16 %v139_v27, %v138_v26  ;;  %v368_v31 = vpack.c.bf16 %v141_v30, %v140_v29  ;;  %v258_v32 = vld [vmem:[%s526_s2] ss:$0 sm:$0xff] }
   0xb   :  { %347 = vmatpush3.bf16.msra.mxu1 %v344_v12  ;;  %v261_v47 = vld [vmem:[%s528_s4] ss:$0 sm:$0xff]  ;;  %p386_p3 = por %p385_p2, %p384_p1 }
   0xc   :  { %295 = vmatmul.mubr.msk.f32.vlgmr.msra.gmra.mrb[0].mxu0 %vm34_vm0, %v22_v16  ;;  %349 = vmatprep.subr.bf16.mxu1 %v348_v15 }
   0xd   :  { %p387_p4 = pnand %p386_p3, %p380_p0 }
   0xf   :  { %351 = vmatpush3.bf16.msra.mxu1 %v348_v15 }
  0x10   :  { %353 = vmatprep.subr.bf16.mxu1 %v352_v19 }
  0x13   :  { %355 = vmatpush3.bf16.msra.mxu1 %v352_v19 }
  0x14   :  { %357 = vmatprep.subr.bf16.mxu1 %v356_v22 }
  0x17   :  { %359 = vmatpush3.bf16.msra.mxu1 %v356_v22 }
  0x18   :  { %361 = vmatprep.subr.bf16.mxu1 %v360_v25 }
  0x1b   :  { %363 = vmatpush3.bf16.msra.mxu1 %v360_v25 }
  0x1c   :  { %365 = vmatprep.subr.bf16.mxu1 %v364_v28 }
  0x1f   :  { %367 = vmatpush3.bf16.msra.mxu1 %v364_v28 }
  0x20   :  { %369 = vmatprep.subr.bf16.mxu1 %v368_v31 }
  0x23   :  { %371 = vmatpush3.bf16.msra.mxu1 %v368_v31 }
  0xdf   :  { %v296_v33 = vpop.f32.mrb[0].mxu0 }
  0xe0   :  { %v113_v34 = vadd.f32 %v296_v33, %v258_v32  ;;  %v107_v35 = vpop.f32.mrb[1].mxu0 }
  0xe1   :  { %v108_v36 = vadd.f32 %v258_v32, %v107_v35 }
  0xe2   :  { %v119_v37 = vmul.f32 0.70710677, %v113_v34  ;;  %v117_v44 = vmul.f32 0.5, %v113_v34 }
  0xe3   :  { %v118_v38 = vmul.f32 0.70710677, %v108_v36  ;;  %v116_v42 = vmul.f32 0.5, %v108_v36 }
  0xe4   :  { %375 = verf.f32 %v119_v37 }
  0xe5   :  { %377 = verf.f32 %v118_v38 }
  0xee   :  { %v376_v39 = vpop.eup %375 }
  0xef   :  { %v378_v40 = vpop.eup %377  ;;  %v123_v41 = vadd.f32 1.0, %v376_v39 }
  0xf0   :  { %v122_v43 = vadd.f32 1.0, %v378_v40 }
  0xf1   :  { %v125_v46 = vmul.f32 %v123_v41, %v117_v44 }
  0xf2   :  { %v124_v45 = vmul.f32 %v122_v43, %v116_v42 }
  0xf4   :  { %329 = vmatprep.mubr.f32.mxu1 %v124_v45 }
  0xf5   :  { %330 = vmatmul.mubr.f32.vlgmr.msra.gmra.mrb[0].mxu1 %v125_v46 }
 0x1c8   :  { %v331_v48 = vpop.f32.mrb[0].mxu1 }
 0x1c9   :  { %v229_v49 = vadd.f32 %v331_v48, %v261_v47  ;;  %v208_v50 = vpop.f32.mrb[1].mxu1 }
 0x1ca   :  { %v228_v51 = vadd.f32 %v261_v47, %v208_v50 }
 0x1cb   :  { %231 = vst.msk [vmem:[#allocation2 + $0x8] sm:$0xff] %vm34_vm0, %v229_v49 }
 0x1cc   :  { %230 = vst.msk [vmem:[#allocation2] sm:$0xff] %vm34_vm0, %v228_v51 }
 0x1cd   :  { %390 = shalt.err (!%p387_p4)
}
 0x1ce   :  { %s391_s15 = scalar_lea.hbm %s529_s5, 256 }
 0x1cf   :  { %p392_p5 = scmp.ne.s32.totalorder %s529_s5, %s391_s15  ;;  %p395_p6 = scmp.lt.u32.totalorder %s391_s15, %s529_s5 }
 0x1d1   :  { %p397_p7 = pnand %p395_p6, %p392_p5 }
 0x1d3   :  { %400 = shalt.err (!%p397_p7)
}
 0x1d4   :  { %s404_s20 = smov 128   ;;  %s405_s21 = smov 8  }
 0x1d5   :  { %253 = dma.vmem_to_hbm [thread:$0]  %s248_s12, 256, %s529_s5, [#allocation3], %s404_s20, %s404_s20, %s405_s21  }
 0x1d6   :  { %401 = dma.done.wait [#allocation3], 256  }
 0x1d7   :  { %402 = vsyncadd [#allocation3], 4294967040 }
 0x1d8   :  { %257 = vsyncpa [#allocation3], 1 }

</bundles_post_ra>
